<compile_context>
chip_gen: v5e
topology: v5e:2x2
jax: 0.10.0
libtpu: 0.0.40
codegen_flags: <defaults>
</compile_context>

<pallas_src>
import functools
import math

import jax
import jax.numpy as jnp
from jax import lax
from jax.experimental import pallas as pl
from jax.experimental.pallas import tpu as pltpu


def _mha_kernel(q_ref, k_ref, v_ref, wq_ref, wk_ref, wv_ref, wo_ref, o_ref, *,
                num_heads):
    xq = q_ref[0]          # (Lq, V)
    xk = k_ref[0]          # (Lk, V)
    xv = v_ref[0]          # (Lk, V)

    head_dim = wq_ref.shape[-1]
    scale = 1.0 / math.sqrt(head_dim)

    out_acc = jnp.zeros((xq.shape[0], o_ref.shape[-1]), jnp.float32)

    # H is a compile-time constant and small: unroll so the LLO scheduler sees
    # the whole head loop.  TODO(synk): for large H switch to lax.fori_loop with
    # an f32 carry (weight refs support dynamic leading-axis indexing).
    for h in range(num_heads):
        wq_h = wq_ref[h]   # (V, D)  leading-axis index of the resident weight block
        wk_h = wk_ref[h]
        wv_h = wv_ref[h]
        wo_h = wo_ref[h]   # (D, V)

        # Per-head projections: (L, V) @ (V, D) -> (L, D), f32 accumulation on MXU.
        qh = jnp.dot(xq, wq_h, preferred_element_type=jnp.float32) * scale
        kh = jnp.dot(xk, wk_h, preferred_element_type=jnp.float32)
        vh = jnp.dot(xv, wv_h, preferred_element_type=jnp.float32)

        # scores = Q K^T without an explicit transpose: contract last dims directly.
        scores = lax.dot_general(
            qh, kh, dimension_numbers=(((1,), (1,)), ((), ())),
            preferred_element_type=jnp.float32)                   # (Lq, Lk) f32

        # Row-wise softmax in f32; reciprocal goes to the EUP slot.
        # TODO(synk): attention-weight dropout is treated as identity (eval mode).
        scores = scores - jnp.max(scores, axis=-1, keepdims=True)
        p = jnp.exp(scores)
        p = p * pl.reciprocal(jnp.sum(p, axis=-1, keepdims=True), approx=True)

        head_out = jnp.dot(p, vh, preferred_element_type=jnp.float32)  # (Lq, D)

        # Fold this head's slice of the output projection into the vreg-resident
        # accumulator (equivalent to concat(heads) @ Wo, no concatenate, no VMEM
        # read-modify-write).
        out_acc = out_acc + jnp.dot(head_out, wo_h,
                                    preferred_element_type=jnp.float32)

    o_ref[0] = out_acc.astype(o_ref.dtype)


def prepare_weights(wq, wk, wv, wo, num_heads, compute_dtype=jnp.float32):
    """One-time weight layout (do this at model init, NOT per forward call).

    wq/wk/wv: (V, H*D) -> (H, V, D);  wo: (H*D, V) -> (H, D, V).
      wq.reshape(V,H,D)[:,h,:] == wq[:, h*D:(h+1)*D]
      wo.reshape(H,D,V)[h]     == wo[h*D:(h+1)*D, :]
    """
    Vd = wq.shape[0]
    D = wq.shape[1] // num_heads
    wq_h = wq.reshape(Vd, num_heads, D).transpose(1, 0, 2).astype(compute_dtype)
    wk_h = wk.reshape(Vd, num_heads, D).transpose(1, 0, 2).astype(compute_dtype)
    wv_h = wv.reshape(Vd, num_heads, D).transpose(1, 0, 2).astype(compute_dtype)
    wo_h = wo.reshape(num_heads, D, Vd).astype(compute_dtype)
    return wq_h, wk_h, wv_h, wo_h


def multi_head_attention(q, k, v, wq_h, wk_h, wv_h, wo_h,
                         compute_dtype=jnp.float32):
    """q,k,v: (B, L, V). Weights pre-laid-out by prepare_weights. Returns (B, Lq, V)."""
    B, Lq, Vd = q.shape
    Lk = k.shape[1]
    H, _, D = wq_h.shape

    qc = q.astype(compute_dtype)
    kc = k.astype(compute_dtype)
    vc = v.astype(compute_dtype)

    kernel = functools.partial(_mha_kernel, num_heads=H)

    return pl.pallas_call(
        kernel,
        out_shape=jax.ShapeDtypeStruct((B, Lq, Vd), q.dtype),
        grid=(B,),                              # single batch axis; heads in-kernel
        in_specs=[
            pl.BlockSpec((1, Lq, Vd), lambda b: (b, 0, 0)),
            pl.BlockSpec((1, Lk, Vd), lambda b: (b, 0, 0)),
            pl.BlockSpec((1, Lk, Vd), lambda b: (b, 0, 0)),
            # Whole weight arrays with constant block index: DMA'd once, then
            # VMEM-resident across every batch grid step.
            pl.BlockSpec((H, Vd, D), lambda b: (0, 0, 0)),
            pl.BlockSpec((H, Vd, D), lambda b: (0, 0, 0)),
            pl.BlockSpec((H, Vd, D), lambda b: (0, 0, 0)),
            pl.BlockSpec((H, D, Vd), lambda b: (0, 0, 0)),
        ],
        out_specs=pl.BlockSpec((1, Lq, Vd), lambda b: (b, 0, 0)),
        compiler_params=pltpu.CompilerParams(
            # Batch axis is independent -> "parallel" (splits across the 2 TCs on v7x).
            dimension_semantics=("parallel",),
            vmem_limit_bytes=32 * 1024 * 1024,   # safe on v5e/v6e/v7x at these sizes
        ),
    )(qc, kc, vc, wq_h, wk_h, wv_h, wo_h)


def _reference(q, k, v, wq, wk, wv, wo, num_heads):
    """Pure-JAX f32 reference mirroring the PyTorch forward (dropout = identity)."""
    B, Lq, Vd = q.shape

    def tq(X):  # transpose_qkv
        X = X.reshape(X.shape[0], X.shape[1], num_heads, -1)
        X = jnp.transpose(X, (0, 2, 1, 3))
        return X.reshape(-1, X.shape[2], X.shape[3])

    Q = tq(q @ wq)
    K = tq(k @ wk)
    V = tq(v @ wv)
    s = jnp.einsum("bqd,bkd->bqk", Q, K) / math.sqrt(Q.shape[-1])
    p = jax.nn.softmax(s, axis=-1)
    o = jnp.einsum("bqk,bkd->bqd", p, V)
    o = o.reshape(-1, num_heads, o.shape[1], o.shape[2])
    o = jnp.transpose(o, (0, 2, 1, 3)).reshape(B, Lq, -1)
    return o @ wo


if __name__ == "__main__":
    vocab_size = 16
    num_heads = 4
    B, Lq, Lk = 2, 8, 8

    key = jax.random.PRNGKey(0)
    kq, kk, kv, kwq, kwk, kwv, kwo = jax.random.split(key, 7)

    q = jax.random.normal(kq, (B, Lq, vocab_size), dtype=jnp.float32)
    k = jax.random.normal(kk, (B, Lk, vocab_size), dtype=jnp.float32)
    v = jax.random.normal(kv, (B, Lk, vocab_size), dtype=jnp.float32)

    # nn.Linear-style uniform(-1/sqrt(in), 1/sqrt(in)) init, stored as (in, out).
    lim_in = 1.0 / math.sqrt(vocab_size)
    lim_out = 1.0 / math.sqrt(vocab_size * num_heads)
    wq = jax.random.uniform(kwq, (vocab_size, vocab_size * num_heads),
                            minval=-lim_in, maxval=lim_in, dtype=jnp.float32)
    wk = jax.random.uniform(kwk, (vocab_size, vocab_size * num_heads),
                            minval=-lim_in, maxval=lim_in, dtype=jnp.float32)
    wv = jax.random.uniform(kwv, (vocab_size, vocab_size * num_heads),
                            minval=-lim_in, maxval=lim_in, dtype=jnp.float32)
    wo = jax.random.uniform(kwo, (vocab_size * num_heads, vocab_size),
                            minval=-lim_out, maxval=lim_out, dtype=jnp.float32)

    ref = _reference(q, k, v, wq, wk, wv, wo, num_heads)

    # Default path: cast-free f32 everywhere (best at these shapes, esp. on v5e).
    w_f32 = prepare_weights(wq, wk, wv, wo, num_heads, compute_dtype=jnp.float32)
    out_f32 = multi_head_attention(q, k, v, *w_f32, compute_dtype=jnp.float32)
    out_f32 = jax.block_until_ready(out_f32)
    assert out_f32.shape == (B, Lq, vocab_size)
    assert jnp.allclose(out_f32, ref, atol=5e-3, rtol=5e-3), "f32 path mismatch vs reference"

    # Optional bf16-operand path (projection MXU operands in bf16; softmax and all
    # accumulation stay f32).  Useful on v6e/v7x at larger shapes.
    w_bf16 = prepare_weights(wq, wk, wv, wo, num_heads, compute_dtype=jnp.bfloat16)
    out_bf16 = multi_head_attention(q, k, v, *w_bf16, compute_dtype=jnp.bfloat16)
    out_bf16 = jax.block_until_ready(out_bf16)
    assert jnp.allclose(out_bf16, ref, atol=2e-2, rtol=2e-2), "bf16 path mismatch vs reference"

    print("KERNEL_OK")
</pallas_src>

<mosaic_0001>
module attributes {stable_mosaic.version = 11 : i64} {
  func.func @_mha_kernel(%arg0: i32, %arg1: memref<1x8x16xf32, #tpu.memory_space<vmem>>, %arg2: memref<1x8x16xf32, #tpu.memory_space<vmem>>, %arg3: memref<1x8x16xf32, #tpu.memory_space<vmem>>, %arg4: memref<4x16x16xf32, #tpu.memory_space<vmem>>, %arg5: memref<4x16x16xf32, #tpu.memory_space<vmem>>, %arg6: memref<4x16x16xf32, #tpu.memory_space<vmem>>, %arg7: memref<4x16x16xf32, #tpu.memory_space<vmem>>, %arg8: memref<1x8x16xf32, #tpu.memory_space<vmem>>) attributes {dimension_semantics = [#tpu.dimension_semantics<parallel>], iteration_bounds = array<i64: 2>, scalar_prefetch = 0 : i64, scratch_operands = 0 : i64, tpu.core_type = #tpu.core_type<tc>, window_params = [{transform_indices = @transform_0, window_bounds = array<i64: 1, 8, 16>}, {transform_indices = @transform_1, window_bounds = array<i64: 1, 8, 16>}, {transform_indices = @transform_2, window_bounds = array<i64: 1, 8, 16>}, {pipeline_mode = #tpu.pipeline_mode<synchronous>, transform_indices = @transform_3, window_bounds = array<i64: 4, 16, 16>}, {pipeline_mode = #tpu.pipeline_mode<synchronous>, transform_indices = @transform_4, window_bounds = array<i64: 4, 16, 16>}, {pipeline_mode = #tpu.pipeline_mode<synchronous>, transform_indices = @transform_5, window_bounds = array<i64: 4, 16, 16>}, {pipeline_mode = #tpu.pipeline_mode<synchronous>, transform_indices = @transform_6, window_bounds = array<i64: 4, 16, 16>}, {transform_indices = @transform_7, window_bounds = array<i64: 1, 8, 16>}]} {
    %c0 = arith.constant 0 : index
    %c0_0 = arith.constant 0 : index
    %c0_1 = arith.constant 0 : index
    %0 = vector.load %arg1[%c0, %c0_0, %c0_1] : memref<1x8x16xf32, #tpu.memory_space<vmem>>, vector<1x8x16xf32>
    %1 = vector.shape_cast %0 : vector<1x8x16xf32> to vector<8x16xf32>
    %c0_2 = arith.constant 0 : index
    %c0_3 = arith.constant 0 : index
    %c0_4 = arith.constant 0 : index
    %2 = vector.load %arg2[%c0_2, %c0_3, %c0_4] : memref<1x8x16xf32, #tpu.memory_space<vmem>>, vector<1x8x16xf32>
    %3 = vector.shape_cast %2 : vector<1x8x16xf32> to vector<8x16xf32>
    %c0_5 = arith.constant 0 : index
    %c0_6 = arith.constant 0 : index
    %c0_7 = arith.constant 0 : index
    %4 = vector.load %arg3[%c0_5, %c0_6, %c0_7] : memref<1x8x16xf32, #tpu.memory_space<vmem>>, vector<1x8x16xf32>
    %5 = vector.shape_cast %4 : vector<1x8x16xf32> to vector<8x16xf32>
    %cst = arith.constant 0.000000e+00 : f32
    %6 = vector.broadcast %cst : f32 to vector<8x16xf32>
    %c0_8 = arith.constant 0 : index
    %c0_9 = arith.constant 0 : index
    %c0_10 = arith.constant 0 : index
    %7 = vector.load %arg4[%c0_8, %c0_9, %c0_10] : memref<4x16x16xf32, #tpu.memory_space<vmem>>, vector<1x16x16xf32>
    %8 = vector.shape_cast %7 : vector<1x16x16xf32> to vector<16x16xf32>
    %c0_11 = arith.constant 0 : index
    %c0_12 = arith.constant 0 : index
    %c0_13 = arith.constant 0 : index
    %9 = vector.load %arg5[%c0_11, %c0_12, %c0_13] : memref<4x16x16xf32, #tpu.memory_space<vmem>>, vector<1x16x16xf32>
    %10 = vector.shape_cast %9 : vector<1x16x16xf32> to vector<16x16xf32>
    %c0_14 = arith.constant 0 : index
    %c0_15 = arith.constant 0 : index
    %c0_16 = arith.constant 0 : index
    %11 = vector.load %arg6[%c0_14, %c0_15, %c0_16] : memref<4x16x16xf32, #tpu.memory_space<vmem>>, vector<1x16x16xf32>
    %12 = vector.shape_cast %11 : vector<1x16x16xf32> to vector<16x16xf32>
    %c0_17 = arith.constant 0 : index
    %c0_18 = arith.constant 0 : index
    %c0_19 = arith.constant 0 : index
    %13 = vector.load %arg7[%c0_17, %c0_18, %c0_19] : memref<4x16x16xf32, #tpu.memory_space<vmem>>, vector<1x16x16xf32>
    %14 = vector.shape_cast %13 : vector<1x16x16xf32> to vector<16x16xf32>
    %cst_20 = arith.constant dense<0.000000e+00> : vector<8x16xf32>
    %15 = tpu.matmul %1, %8, %cst_20 {dimension_numbers = #tpu.dot_dimension_numbers<[1], [0], [0], [1], [0, 0, 1, 1], [], []>} : vector<8x16xf32>, vector<16x16xf32>, vector<8x16xf32> -> vector<8x16xf32>
    %cst_21 = arith.constant 2.500000e-01 : f32
    %16 = vector.broadcast %cst_21 : f32 to vector<8x16xf32>
    %17 = arith.mulf %15, %16 : vector<8x16xf32>
    %cst_22 = arith.constant dense<0.000000e+00> : vector<8x16xf32>
    %18 = tpu.matmul %3, %10, %cst_22 {dimension_numbers = #tpu.dot_dimension_numbers<[1], [0], [0], [1], [0, 0, 1, 1], [], []>} : vector<8x16xf32>, vector<16x16xf32>, vector<8x16xf32> -> vector<8x16xf32>
    %cst_23 = arith.constant dense<0.000000e+00> : vector<8x16xf32>
    %19 = tpu.matmul %5, %12, %cst_23 {dimension_numbers = #tpu.dot_dimension_numbers<[1], [0], [0], [1], [0, 0, 1, 1], [], []>} : vector<8x16xf32>, vector<16x16xf32>, vector<8x16xf32> -> vector<8x16xf32>
    %cst_24 = arith.constant dense<0.000000e+00> : vector<8x8xf32>
    %20 = tpu.matmul %17, %18, %cst_24 {dimension_numbers = #tpu.dot_dimension_numbers<[1], [1], [0], [0], [0, 0, 1, 0], [], []>} : vector<8x16xf32>, vector<8x16xf32>, vector<8x8xf32> -> vector<8x8xf32>
    %cst_25 = arith.constant dense<0xFF800000> : vector<8xf32>
    %21 = vector.multi_reduction <maximumf>, %20, %cst_25 [1] : vector<8x8xf32> to vector<8xf32>
    %22 = vector.shape_cast %21 : vector<8xf32> to vector<8x1xf32>
    %23 = vector.broadcast %22 : vector<8x1xf32> to vector<8x8xf32>
    %24 = arith.subf %20, %23 : vector<8x8xf32>
    %25 = math.exp %24 : vector<8x8xf32>
    %cst_26 = arith.constant dense<0.000000e+00> : vector<8xf32>
    %26 = vector.multi_reduction <add>, %25, %cst_26 [1] : vector<8x8xf32> to vector<8xf32>
    %27 = vector.shape_cast %26 : vector<8xf32> to vector<8x1xf32>
    %28 = tpu.reciprocal %27 {approx = true} : vector<8x1xf32> -> vector<8x1xf32>
    %29 = vector.broadcast %28 : vector<8x1xf32> to vector<8x8xf32>
    %30 = arith.mulf %25, %29 : vector<8x8xf32>
    %cst_27 = arith.constant dense<0.000000e+00> : vector<8x16xf32>
    %31 = tpu.matmul %30, %19, %cst_27 {dimension_numbers = #tpu.dot_dimension_numbers<[1], [0], [0], [1], [0, 0, 1, 1], [], []>} : vector<8x8xf32>, vector<8x16xf32>, vector<8x16xf32> -> vector<8x16xf32>
    %cst_28 = arith.constant dense<0.000000e+00> : vector<8x16xf32>
    %32 = tpu.matmul %31, %14, %cst_28 {dimension_numbers = #tpu.dot_dimension_numbers<[1], [0], [0], [1], [0, 0, 1, 1], [], []>} : vector<8x16xf32>, vector<16x16xf32>, vector<8x16xf32> -> vector<8x16xf32>
    %33 = arith.addf %6, %32 : vector<8x16xf32>
    %c1 = arith.constant 1 : index
    %c0_29 = arith.constant 0 : index
    %c0_30 = arith.constant 0 : index
    %34 = vector.load %arg4[%c1, %c0_29, %c0_30] : memref<4x16x16xf32, #tpu.memory_space<vmem>>, vector<1x16x16xf32>
    %35 = vector.shape_cast %34 : vector<1x16x16xf32> to vector<16x16xf32>
    %c1_31 = arith.constant 1 : index
    %c0_32 = arith.constant 0 : index
    %c0_33 = arith.constant 0 : index
    %36 = vector.load %arg5[%c1_31, %c0_32, %c0_33] : memref<4x16x16xf32, #tpu.memory_space<vmem>>, vector<1x16x16xf32>
    %37 = vector.shape_cast %36 : vector<1x16x16xf32> to vector<16x16xf32>
    %c1_34 = arith.constant 1 : index
    %c0_35 = arith.constant 0 : index
    %c0_36 = arith.constant 0 : index
    %38 = vector.load %arg6[%c1_34, %c0_35, %c0_36] : memref<4x16x16xf32, #tpu.memory_space<vmem>>, vector<1x16x16xf32>
    %39 = vector.shape_cast %38 : vector<1x16x16xf32> to vector<16x16xf32>
    %c1_37 = arith.constant 1 : index
    %c0_38 = arith.constant 0 : index
    %c0_39 = arith.constant 0 : index
    %40 = vector.load %arg7[%c1_37, %c0_38, %c0_39] : memref<4x16x16xf32, #tpu.memory_space<vmem>>, vector<1x16x16xf32>
    %41 = vector.shape_cast %40 : vector<1x16x16xf32> to vector<16x16xf32>
    %cst_40 = arith.constant dense<0.000000e+00> : vector<8x16xf32>
    %42 = tpu.matmul %1, %35, %cst_40 {dimension_numbers = #tpu.dot_dimension_numbers<[1], [0], [0], [1], [0, 0, 1, 1], [], []>} : vector<8x16xf32>, vector<16x16xf32>, vector<8x16xf32> -> vector<8x16xf32>
    %cst_41 = arith.constant 2.500000e-01 : f32
    %43 = vector.broadcast %cst_41 : f32 to vector<8x16xf32>
    %44 = arith.mulf %42, %43 : vector<8x16xf32>
    %cst_42 = arith.constant dense<0.000000e+00> : vector<8x16xf32>
    %45 = tpu.matmul %3, %37, %cst_42 {dimension_numbers = #tpu.dot_dimension_numbers<[1], [0], [0], [1], [0, 0, 1, 1], [], []>} : vector<8x16xf32>, vector<16x16xf32>, vector<8x16xf32> -> vector<8x16xf32>
    %cst_43 = arith.constant dense<0.000000e+00> : vector<8x16xf32>
    %46 = tpu.matmul %5, %39, %cst_43 {dimension_numbers = #tpu.dot_dimension_numbers<[1], [0], [0], [1], [0, 0, 1, 1], [], []>} : vector<8x16xf32>, vector<16x16xf32>, vector<8x16xf32> -> vector<8x16xf32>
    %cst_44 = arith.constant dense<0.000000e+00> : vector<8x8xf32>
    %47 = tpu.matmul %44, %45, %cst_44 {dimension_numbers = #tpu.dot_dimension_numbers<[1], [1], [0], [0], [0, 0, 1, 0], [], []>} : vector<8x16xf32>, vector<8x16xf32>, vector<8x8xf32> -> vector<8x8xf32>
    %cst_45 = arith.constant dense<0xFF800000> : vector<8xf32>
    %48 = vector.multi_reduction <maximumf>, %47, %cst_45 [1] : vector<8x8xf32> to vector<8xf32>
    %49 = vector.shape_cast %48 : vector<8xf32> to vector<8x1xf32>
    %50 = vector.broadcast %49 : vector<8x1xf32> to vector<8x8xf32>
    %51 = arith.subf %47, %50 : vector<8x8xf32>
    %52 = math.exp %51 : vector<8x8xf32>
    %cst_46 = arith.constant dense<0.000000e+00> : vector<8xf32>
    %53 = vector.multi_reduction <add>, %52, %cst_46 [1] : vector<8x8xf32> to vector<8xf32>
    %54 = vector.shape_cast %53 : vector<8xf32> to vector<8x1xf32>
    %55 = tpu.reciprocal %54 {approx = true} : vector<8x1xf32> -> vector<8x1xf32>
    %56 = vector.broadcast %55 : vector<8x1xf32> to vector<8x8xf32>
    %57 = arith.mulf %52, %56 : vector<8x8xf32>
    %cst_47 = arith.constant dense<0.000000e+00> : vector<8x16xf32>
    %58 = tpu.matmul %57, %46, %cst_47 {dimension_numbers = #tpu.dot_dimension_numbers<[1], [0], [0], [1], [0, 0, 1, 1], [], []>} : vector<8x8xf32>, vector<8x16xf32>, vector<8x16xf32> -> vector<8x16xf32>
    %cst_48 = arith.constant dense<0.000000e+00> : vector<8x16xf32>
    %59 = tpu.matmul %58, %41, %cst_48 {dimension_numbers = #tpu.dot_dimension_numbers<[1], [0], [0], [1], [0, 0, 1, 1], [], []>} : vector<8x16xf32>, vector<16x16xf32>, vector<8x16xf32> -> vector<8x16xf32>
    %60 = arith.addf %33, %59 : vector<8x16xf32>
    %c2 = arith.constant 2 : index
    %c0_49 = arith.constant 0 : index
    %c0_50 = arith.constant 0 : index
    %61 = vector.load %arg4[%c2, %c0_49, %c0_50] : memref<4x16x16xf32, #tpu.memory_space<vmem>>, vector<1x16x16xf32>
    %62 = vector.shape_cast %61 : vector<1x16x16xf32> to vector<16x16xf32>
    %c2_51 = arith.constant 2 : index
    %c0_52 = arith.constant 0 : index
    %c0_53 = arith.constant 0 : index
    %63 = vector.load %arg5[%c2_51, %c0_52, %c0_53] : memref<4x16x16xf32, #tpu.memory_space<vmem>>, vector<1x16x16xf32>
    %64 = vector.shape_cast %63 : vector<1x16x16xf32> to vector<16x16xf32>
    %c2_54 = arith.constant 2 : index
    %c0_55 = arith.constant 0 : index
    %c0_56 = arith.constant 0 : index
    %65 = vector.load %arg6[%c2_54, %c0_55, %c0_56] : memref<4x16x16xf32, #tpu.memory_space<vmem>>, vector<1x16x16xf32>
    %66 = vector.shape_cast %65 : vector<1x16x16xf32> to vector<16x16xf32>
    %c2_57 = arith.constant 2 : index
    %c0_58 = arith.constant 0 : index
    %c0_59 = arith.constant 0 : index
    %67 = vector.load %arg7[%c2_57, %c0_58, %c0_59] : memref<4x16x16xf32, #tpu.memory_space<vmem>>, vector<1x16x16xf32>
    %68 = vector.shape_cast %67 : vector<1x16x16xf32> to vector<16x16xf32>
    %cst_60 = arith.constant dense<0.000000e+00> : vector<8x16xf32>
    %69 = tpu.matmul %1, %62, %cst_60 {dimension_numbers = #tpu.dot_dimension_numbers<[1], [0], [0], [1], [0, 0, 1, 1], [], []>} : vector<8x16xf32>, vector<16x16xf32>, vector<8x16xf32> -> vector<8x16xf32>
    %cst_61 = arith.constant 2.500000e-01 : f32
    %70 = vector.broadcast %cst_61 : f32 to vector<8x16xf32>
    %71 = arith.mulf %69, %70 : vector<8x16xf32>
    %cst_62 = arith.constant dense<0.000000e+00> : vector<8x16xf32>
    %72 = tpu.matmul %3, %64, %cst_62 {dimension_numbers = #tpu.dot_dimension_numbers<[1], [0], [0], [1], [0, 0, 1, 1], [], []>} : vector<8x16xf32>, vector<16x16xf32>, vector<8x16xf32> -> vector<8x16xf32>
    %cst_63 = arith.constant dense<0.000000e+00> : vector<8x16xf32>
    %73 = tpu.matmul %5, %66, %cst_63 {dimension_numbers = #tpu.dot_dimension_numbers<[1], [0], [0], [1], [0, 0, 1, 1], [], []>} : vector<8x16xf32>, vector<16x16xf32>, vector<8x16xf32> -> vector<8x16xf32>
    %cst_64 = arith.constant dense<0.000000e+00> : vector<8x8xf32>
    %74 = tpu.matmul %71, %72, %cst_64 {dimension_numbers = #tpu.dot_dimension_numbers<[1], [1], [0], [0], [0, 0, 1, 0], [], []>} : vector<8x16xf32>, vector<8x16xf32>, vector<8x8xf32> -> vector<8x8xf32>
    %cst_65 = arith.constant dense<0xFF800000> : vector<8xf32>
    %75 = vector.multi_reduction <maximumf>, %74, %cst_65 [1] : vector<8x8xf32> to vector<8xf32>
    %76 = vector.shape_cast %75 : vector<8xf32> to vector<8x1xf32>
    %77 = vector.broadcast %76 : vector<8x1xf32> to vector<8x8xf32>
    %78 = arith.subf %74, %77 : vector<8x8xf32>
    %79 = math.exp %78 : vector<8x8xf32>
    %cst_66 = arith.constant dense<0.000000e+00> : vector<8xf32>
    %80 = vector.multi_reduction <add>, %79, %cst_66 [1] : vector<8x8xf32> to vector<8xf32>
    %81 = vector.shape_cast %80 : vector<8xf32> to vector<8x1xf32>
    %82 = tpu.reciprocal %81 {approx = true} : vector<8x1xf32> -> vector<8x1xf32>
    %83 = vector.broadcast %82 : vector<8x1xf32> to vector<8x8xf32>
    %84 = arith.mulf %79, %83 : vector<8x8xf32>
    %cst_67 = arith.constant dense<0.000000e+00> : vector<8x16xf32>
    %85 = tpu.matmul %84, %73, %cst_67 {dimension_numbers = #tpu.dot_dimension_numbers<[1], [0], [0], [1], [0, 0, 1, 1], [], []>} : vector<8x8xf32>, vector<8x16xf32>, vector<8x16xf32> -> vector<8x16xf32>
    %cst_68 = arith.constant dense<0.000000e+00> : vector<8x16xf32>
    %86 = tpu.matmul %85, %68, %cst_68 {dimension_numbers = #tpu.dot_dimension_numbers<[1], [0], [0], [1], [0, 0, 1, 1], [], []>} : vector<8x16xf32>, vector<16x16xf32>, vector<8x16xf32> -> vector<8x16xf32>
    %87 = arith.addf %60, %86 : vector<8x16xf32>
    %c3 = arith.constant 3 : index
    %c0_69 = arith.constant 0 : index
    %c0_70 = arith.constant 0 : index
    %88 = vector.load %arg4[%c3, %c0_69, %c0_70] : memref<4x16x16xf32, #tpu.memory_space<vmem>>, vector<1x16x16xf32>
    %89 = vector.shape_cast %88 : vector<1x16x16xf32> to vector<16x16xf32>
    %c3_71 = arith.constant 3 : index
    %c0_72 = arith.constant 0 : index
    %c0_73 = arith.constant 0 : index
    %90 = vector.load %arg5[%c3_71, %c0_72, %c0_73] : memref<4x16x16xf32, #tpu.memory_space<vmem>>, vector<1x16x16xf32>
    %91 = vector.shape_cast %90 : vector<1x16x16xf32> to vector<16x16xf32>
    %c3_74 = arith.constant 3 : index
    %c0_75 = arith.constant 0 : index
    %c0_76 = arith.constant 0 : index
    %92 = vector.load %arg6[%c3_74, %c0_75, %c0_76] : memref<4x16x16xf32, #tpu.memory_space<vmem>>, vector<1x16x16xf32>
    %93 = vector.shape_cast %92 : vector<1x16x16xf32> to vector<16x16xf32>
    %c3_77 = arith.constant 3 : index
    %c0_78 = arith.constant 0 : index
    %c0_79 = arith.constant 0 : index
    %94 = vector.load %arg7[%c3_77, %c0_78, %c0_79] : memref<4x16x16xf32, #tpu.memory_space<vmem>>, vector<1x16x16xf32>
    %95 = vector.shape_cast %94 : vector<1x16x16xf32> to vector<16x16xf32>
    %cst_80 = arith.constant dense<0.000000e+00> : vector<8x16xf32>
    %96 = tpu.matmul %1, %89, %cst_80 {dimension_numbers = #tpu.dot_dimension_numbers<[1], [0], [0], [1], [0, 0, 1, 1], [], []>} : vector<8x16xf32>, vector<16x16xf32>, vector<8x16xf32> -> vector<8x16xf32>
    %cst_81 = arith.constant 2.500000e-01 : f32
    %97 = vector.broadcast %cst_81 : f32 to vector<8x16xf32>
    %98 = arith.mulf %96, %97 : vector<8x16xf32>
    %cst_82 = arith.constant dense<0.000000e+00> : vector<8x16xf32>
    %99 = tpu.matmul %3, %91, %cst_82 {dimension_numbers = #tpu.dot_dimension_numbers<[1], [0], [0], [1], [0, 0, 1, 1], [], []>} : vector<8x16xf32>, vector<16x16xf32>, vector<8x16xf32> -> vector<8x16xf32>
    %cst_83 = arith.constant dense<0.000000e+00> : vector<8x16xf32>
    %100 = tpu.matmul %5, %93, %cst_83 {dimension_numbers = #tpu.dot_dimension_numbers<[1], [0], [0], [1], [0, 0, 1, 1], [], []>} : vector<8x16xf32>, vector<16x16xf32>, vector<8x16xf32> -> vector<8x16xf32>
    %cst_84 = arith.constant dense<0.000000e+00> : vector<8x8xf32>
    %101 = tpu.matmul %98, %99, %cst_84 {dimension_numbers = #tpu.dot_dimension_numbers<[1], [1], [0], [0], [0, 0, 1, 0], [], []>} : vector<8x16xf32>, vector<8x16xf32>, vector<8x8xf32> -> vector<8x8xf32>
    %cst_85 = arith.constant dense<0xFF800000> : vector<8xf32>
    %102 = vector.multi_reduction <maximumf>, %101, %cst_85 [1] : vector<8x8xf32> to vector<8xf32>
    %103 = vector.shape_cast %102 : vector<8xf32> to vector<8x1xf32>
    %104 = vector.broadcast %103 : vector<8x1xf32> to vector<8x8xf32>
    %105 = arith.subf %101, %104 : vector<8x8xf32>
    %106 = math.exp %105 : vector<8x8xf32>
    %cst_86 = arith.constant dense<0.000000e+00> : vector<8xf32>
    %107 = vector.multi_reduction <add>, %106, %cst_86 [1] : vector<8x8xf32> to vector<8xf32>
    %108 = vector.shape_cast %107 : vector<8xf32> to vector<8x1xf32>
    %109 = tpu.reciprocal %108 {approx = true} : vector<8x1xf32> -> vector<8x1xf32>
    %110 = vector.broadcast %109 : vector<8x1xf32> to vector<8x8xf32>
    %111 = arith.mulf %106, %110 : vector<8x8xf32>
    %cst_87 = arith.constant dense<0.000000e+00> : vector<8x16xf32>
    %112 = tpu.matmul %111, %100, %cst_87 {dimension_numbers = #tpu.dot_dimension_numbers<[1], [0], [0], [1], [0, 0, 1, 1], [], []>} : vector<8x8xf32>, vector<8x16xf32>, vector<8x16xf32> -> vector<8x16xf32>
    %cst_88 = arith.constant dense<0.000000e+00> : vector<8x16xf32>
    %113 = tpu.matmul %112, %95, %cst_88 {dimension_numbers = #tpu.dot_dimension_numbers<[1], [0], [0], [1], [0, 0, 1, 1], [], []>} : vector<8x16xf32>, vector<16x16xf32>, vector<8x16xf32> -> vector<8x16xf32>
    %114 = arith.addf %87, %113 : vector<8x16xf32>
    %c0_89 = arith.constant 0 : index
    %c0_90 = arith.constant 0 : index
    %c0_91 = arith.constant 0 : index
    %115 = vector.load %arg8[%c0_89, %c0_90, %c0_91] : memref<1x8x16xf32, #tpu.memory_space<vmem>>, vector<1x8x16xf32>
    %116 = vector.shape_cast %115 : vector<1x8x16xf32> to vector<8x16xf32>
    %117 = vector.shape_cast %114 : vector<8x16xf32> to vector<1x8x16xf32>
    tpu.vector_store %arg8[%c0_89, %c0_90, %c0_91], %117 {strides = array<i32>} : memref<1x8x16xf32, #tpu.memory_space<vmem>>, vector<1x8x16xf32>,
    return
  }
  func.func @transform_0(%arg0: i32) -> (i32, i32, i32) {
    %c0_i32 = arith.constant 0 : i32
    %c0_i32_0 = arith.constant 0 : i32
    %c0_i32_1 = arith.constant 0 : i32
    return %arg0, %c0_i32, %c0_i32_0 : i32, i32, i32
  }
  func.func @transform_1(%arg0: i32) -> (i32, i32, i32) {
    %c0_i32 = arith.constant 0 : i32
    %c0_i32_0 = arith.constant 0 : i32
    %c0_i32_1 = arith.constant 0 : i32
    return %arg0, %c0_i32, %c0_i32_0 : i32, i32, i32
  }
  func.func @transform_2(%arg0: i32) -> (i32, i32, i32) {
    %c0_i32 = arith.constant 0 : i32
    %c0_i32_0 = arith.constant 0 : i32
    %c0_i32_1 = arith.constant 0 : i32
    return %arg0, %c0_i32, %c0_i32_0 : i32, i32, i32
  }
  func.func @transform_3(%arg0: i32) -> (i32, i32, i32) {
    %c0_i32 = arith.constant 0 : i32
    %c0_i32_0 = arith.constant 0 : i32
    %c0_i32_1 = arith.constant 0 : i32
    %c0_i32_2 = arith.constant 0 : i32
    return %c0_i32, %c0_i32_0, %c0_i32_1 : i32, i32, i32
  }
  func.func @transform_4(%arg0: i32) -> (i32, i32, i32) {
    %c0_i32 = arith.constant 0 : i32
    %c0_i32_0 = arith.constant 0 : i32
    %c0_i32_1 = arith.constant 0 : i32
    %c0_i32_2 = arith.constant 0 : i32
    return %c0_i32, %c0_i32_0, %c0_i32_1 : i32, i32, i32
  }
  func.func @transform_5(%arg0: i32) -> (i32, i32, i32) {
    %c0_i32 = arith.constant 0 : i32
    %c0_i32_0 = arith.constant 0 : i32
    %c0_i32_1 = arith.constant 0 : i32
    %c0_i32_2 = arith.constant 0 : i32
    return %c0_i32, %c0_i32_0, %c0_i32_1 : i32, i32, i32
  }
  func.func @transform_6(%arg0: i32) -> (i32, i32, i32) {
    %c0_i32 = arith.constant 0 : i32
    %c0_i32_0 = arith.constant 0 : i32
    %c0_i32_1 = arith.constant 0 : i32
    %c0_i32_2 = arith.constant 0 : i32
    return %c0_i32, %c0_i32_0, %c0_i32_1 : i32, i32, i32
  }
  func.func @transform_7(%arg0: i32) -> (i32, i32, i32) {
    %c0_i32 = arith.constant 0 : i32
    %c0_i32_0 = arith.constant 0 : i32
    %c0_i32_1 = arith.constant 0 : i32
    return %arg0, %c0_i32, %c0_i32_0 : i32, i32, i32
  }
}

</mosaic_0001>

<bundles_post_ra>
// kernel: tpu_custom_call.1
= control target key start
LH: loop header
LB: loop body
LE: loop exit
PB: predicated region body
PF: predicated region fallthrough
CT: control target
= control target key end

     0   :  { %s2037_s0 = inlined_call_operand.hbm [shape: f32[2,8,16], index: 0, kind: input, shape index: {}]   ;;  %s2038_s1 = inlined_call_operand.hbm [shape: f32[2,8,16], index: 1, kind: input, shape index: {}]   ;;  %s2039_s2 = inlined_call_operand.hbm [shape: f32[2,8,16], index: 2, kind: input, shape index: {}]   ;;  %s2040_s3 = inlined_call_operand.hbm [shape: f32[4,16,16], index: 3, kind: input, shape index: {}]   ;;  %s2041_s4 = inlined_call_operand.hbm [shape: f32[4,16,16], index: 4, kind: input, shape index: {}]   ;;  %s2042_s5 = inlined_call_operand.hbm [shape: f32[4,16,16], index: 5, kind: input, shape index: {}]   ;;  %s2043_s6 = inlined_call_operand.hbm [shape: f32[4,16,16], index: 6, kind: input, shape index: {}]   ;;  %s2044_s7 = inlined_call_operand.hbm [shape: f32[2,8,16], index: 7, kind: output, shape index: {}]  }
   0x1   :  { %2053 = sst [smem:[#allocation22_spill]] %s2038_s1 }
   0x2   :  { %2054 = sst [smem:[#allocation23_spill]] %s2040_s3 }
   0x3   :  { %2055 = sst [smem:[#allocation24_spill]] %s2041_s4 }
   0x4   :  { %2056 = sst [smem:[#allocation25_spill]] %s2042_s5 }
   0x5   :  { %2057 = sst [smem:[#allocation26_spill]] %s2043_s6 }
   0x6   :  { %12 = vsyncpa [#allocation3], 0 }
   0x7   :  { %14 = vsyncpa [#allocation3 + $0x1], 0 }
   0x8   :  { %15 = vsyncpa [#allocation6], 0 }
   0x9   :  { %17 = vsyncpa [#allocation6 + $0x1], 0 }
   0xa   :  { %18 = vsyncpa [#allocation9], 0 }
   0xb   :  { %19 = vsyncpa [#allocation12], 0 }
   0xc   :  { %20 = vsyncpa [#allocation4], 0 }
   0xd   :  { %22 = vsyncpa [#allocation4 + $0x1], 0  ;;  %s1746_s24 = smov 0   ;;  %s1748_s25 = smov 0  }
   0xe   :  { %s1750_s26 = smov 0   ;;  %s1752_s27 = smov 0  }
   0xf LB: > { %s2058_s3 = sld [smem:[#allocation23_spill]]  ;;  %s1770_s8 = sadd.s32 4294967295, %s1698_s27   ;;  %s1698_s27 = sphi %s1752_s27, %s2079_s27   ;;  %s1694_s26 = sphi %s1750_s26, %s2083_s26   ;;  %s1690_s25 = sphi %s1748_s25, %s2082_s25   ;;  %s1686_s24 = sphi %s1746_s24, %s2081_s24  }
  0x10   : > { %p1242_p0 = scmp.ge.s32.totalorder %s1698_s27, 1  ;;  %p2050_p1 = scmp.eq.s32.totalorder %s1770_s8, 0 }
  0x11   : > { %p221_p2 = scmp.lt.s32.totalorder %s1698_s27, 3  ;;  %s1700_s10 = smov [#allocation8]  }
  0x12   : > { %s234_s11 = sshll.u32 %s1700_s10, 4  ;;  %s2060_s5 = sld [smem:[#allocation25_spill]]  ;;  %s235_s11 = int_to_ptr.vmem [resolvable:$true] %s234_s11 }
  0x13   : > { %p1775_p3 = pnand %p1242_p0, %p221_p2  ;;  %s1701_s16 = smov [#allocation11]  }
  0x14   : > { %s262_s17 = sshll.u32 %s1701_s16, 4  ;;  %s2045_s18 = smov 128   ;;  %s263_s17 = int_to_ptr.vmem [resolvable:$true] %s262_s17 }
  0x15   : > { %s232_s30 = sshll.u32 %s2058_s3, 4  ;;  %p1319_p4 = pneg %p1775_p3  ;;  %s233_s30 = int_to_ptr.hbm [resolvable:$true] %s232_s30 }
  0x16   : > { %s2047_s19 = smov 8   ;;  %s1241_s20 = sadd.s32 4294967294, %s1698_s27  }
  0x17   : > { %p1787_p6 = pnand %p1319_p4, %p2050_p1  ;;  %s1803_s21 = sadd.s32 1, %s1698_s27  }
  0x18   : > { %s260_s14 = sshll.u32 %s2060_s5, 4  ;;  %2062 = sst [smem:[#allocation20_spill]] %s1803_s21  ;;  %s261_s14 = int_to_ptr.hbm [resolvable:$true] %s260_s14 }
  0x19   : > { %1322 = dma.hbm_to_vmem [thread:$0]  (!%p1787_p6), %s233_s30, 1024, %s235_s11, [#allocation9], %s2045_s18, %s2045_s18, %s2047_s19  }
  0x1a   : > { %1328 = dma.hbm_to_vmem [thread:$0]  (!%p1787_p6), %s261_s14, 1024, %s263_s17, [#allocation12], %s2045_s18, %s2045_s18, %s2047_s19  }
  0x1b   : > { %s32_s22 = ssub.s32 %s1698_s27, %s1803_s21  ;;  %s35_s23 = sadd.s32 1, %s1694_s26 }
  0x1c   : > { %p33_p7 = scmp.eq.s32.totalorder %s32_s22, 0  ;;  %p42_p8 = scmp.ne.s32.totalorder %s1694_s26, %s1690_s25 }
  0x1d   : > { %p43_p9 = scmp.eq.s32.totalorder %s1698_s27, 0  ;;  %p48_p10 = scmp.ne.s32.totalorder %s1690_s25, %s1686_s24 }
  0x1e   : > { %s1814_s28 = scalar_select %p33_p7, %s1694_s26, %s35_s23  }
  0x1f   : > { %p44_p11 = por %p43_p9, %p42_p8  ;;  %p1818_p12 = por %p2050_p1, %p48_p10 }
  0x20   : > { %2063 = sst [smem:[#allocation21_spill]] %s1814_s28  ;;  %p208_p13 = scmp.eq.s32.totalorder %s1770_s8, 1 }
  0x21   : > { %p214_p0 = scmp.eq.s32.totalorder %s1241_s20, 1  ;;  %p1350_p2 = scmp.lt.s32.totalorder %s1698_s27, 2 }
  0x22   : > { %s2049_s30 = sand.u32 1, %s1694_s26   ;;  %p1825_p4 = por %p208_p13, %p42_p8 }
  0x23   : > { %p1829_p5 = por %p214_p0, %p48_p10  ;;  %s1835_s12 = sshll.u32 %s2049_s30, 3 }
  0x24   : > { %s1838_s13 = sshll.u32 %s1698_s27, 3  ;;  %p1840_p7 = pnand %p1350_p2, %p44_p11 }
  0x25   : > { %s309_s16 = sand.u32 1, %s1698_s27   ;;  %s2068_s1 = sld [smem:[#allocation22_spill]] }
  0x26   : > { %s313_s18 = scalar_lea.vmem [#allocation5], %s1835_s12  ;;  %s1850_s30 = scalar_lea.sflag [#allocation6], %s309_s16 }
  0x27   : > { %s321_s19 = sshll.u32 %s313_s18, 4  ;;  %p1474_p9 = pneg %p1840_p7  ;;  %s322_s19 = int_to_ptr.vmem [resolvable:$true] %s321_s19 }
  0x2b   : > { %s317_s22 = scalar_lea.hbm %s2068_s1, %s1838_s13  ;;  %s1477_s20 = scalar_lea.hbm %s2068_s1, 16 }
  0x2c   : > { %s319_s23 = sshll.u32 %s317_s22, 4  ;;  %s320_s23 = int_to_ptr.hbm [resolvable:$true] %s319_s23 }
  0x2d   : > { %s1470_s3 = sshra.s32 %s320_s23, 4  ;;  %s1471_s3 = int_to_ptr.hbm [resolvable:$true] %s1470_s3 }
  0x2e   : > { %s1472_s5 = scalar_lea.hbm %s1471_s3, 8  ;;  %p1478_p13 = scmp.lt.s32.totalorder %s1471_s3, %s2068_s1 }
  0x2f   : > { %p1473_p8 = scmp.ne.s32.totalorder %s1471_s3, %s1472_s5  ;;  %p1479_p0 = scmp.lt.s32.totalorder %s1477_s20, %s1472_s5 }
  0x31   : > { %p1475_p10 = pnand %p1474_p9, %p1473_p8  ;;  %p1480_p2 = por %p1479_p0, %p1478_p13 }
  0x33   : > { %p1476_p11 = pneg %p1475_p10 }
  0x35   : > { %p1481_p1 = pnand %p1480_p2, %p1476_p11 }
  0x37   : > { %1484 = shalt.err (!%p1481_p1)
}
  0x38   : > { %1338 = dma.hbm_to_vmem [thread:$0]  (!%p1840_p7), %s320_s23, 128, %s322_s19, %s1850_s30  }
  0x39   : > { %s2069_s4 = sld [smem:[#allocation24_spill]]  ;;  %s1704_s17 = smov [#allocation10]  }
  0x3a   : > { %s248_s3 = sshll.u32 %s1704_s17, 4  ;;  %s2070_s6 = sld [smem:[#allocation26_spill]]  ;;  %s249_s3 = int_to_ptr.vmem [resolvable:$true] %s248_s3 }
  0x3b   : > { %s2071_s18 = smov 8   ;;  %s2072_s1 = smov 128  }
  0x3c   : > { %s1705_s19 = smov [#allocation13]   ;;  %s298_s17 = scalar_lea.hbm %s2037_s0, %s1838_s13 }
  0x3d   : > { %s276_s23 = sshll.u32 %s1705_s19, 4  ;;  %s294_s5 = scalar_lea.vmem [#allocation2], %s1835_s12  ;;  %s277_s23 = int_to_ptr.vmem [resolvable:$true] %s276_s23 }
  0x3e   : > { %s302_s20 = sshll.u32 %s294_s5, 4  ;;  %s303_s20 = int_to_ptr.vmem [resolvable:$true] %s302_s20 }
  0x3f   : > { %s246_s28 = sshll.u32 %s2069_s4, 4  ;;  %s300_s4 = sshll.u32 %s298_s17, 4  ;;  %s247_s28 = int_to_ptr.hbm [resolvable:$true] %s246_s28  ;;  %s301_s4 = int_to_ptr.hbm [resolvable:$true] %s300_s4 }
  0x40   : > { %s274_s22 = sshll.u32 %s2070_s6, 4  ;;  %s1560_s6 = sshra.s32 %s301_s4, 4  ;;  %s275_s22 = int_to_ptr.hbm [resolvable:$true] %s274_s22  ;;  %s1561_s6 = int_to_ptr.hbm [resolvable:$true] %s1560_s6 }
  0x41   : > { %1325 = dma.hbm_to_vmem [thread:$0]  (!%p1787_p6), %s247_s28, 1024, %s249_s3, [#allocation9], %s2072_s1, %s2072_s1, %s2071_s18  }
  0x42   : > { %1331 = dma.hbm_to_vmem [thread:$0]  (!%p1787_p6), %s275_s22, 1024, %s277_s23, [#allocation12], %s2072_s1, %s2072_s1, %s2071_s18  }
  0x43   : > { %s2073_s28 = sand.u32 1, %s1694_s26   ;;  %s1562_s19 = scalar_lea.hbm %s1561_s6, 8 }
  0x44   : > { %s291_s3 = scalar_lea.sflag [#allocation3], %s2073_s28  ;;  %p1563_p1 = scmp.ne.s32.totalorder %s1561_s6, %s1562_s19 }
  0x45   : > { %s1567_s22 = scalar_lea.hbm %s2037_s0, 16  ;;  %p1568_p6 = scmp.lt.s32.totalorder %s1561_s6, %s2037_s0 }
  0x46   : > { %p1565_p8 = pnand %p1563_p1, %p1474_p9  ;;  %p1569_p11 = scmp.lt.s32.totalorder %s1567_s22, %s1562_s19 }
  0x48   : > { %p1566_p10 = pneg %p1565_p8  ;;  %p1570_p13 = por %p1569_p11, %p1568_p6 }
  0x4a   : > { %p1571_p0 = pnand %p1570_p13, %p1566_p10 }
  0x4c   : > { %1574 = shalt.err (!%p1571_p0)
}
  0x4d   : > { %1335 = dma.hbm_to_vmem [thread:$0]  (!%p1840_p7), %s301_s4, 128, %s303_s20, %s291_s3  }
  0x4e   : > { %s336_s17 = scalar_lea.hbm %s2039_s2, %s1838_s13  ;;  %s332_s5 = scalar_lea.vmem [#allocation7], %s1835_s12 }
  0x4f   : > { %s340_s28 = sshll.u32 %s332_s5, 4  ;;  %s338_s1 = sshll.u32 %s336_s17, 4  ;;  %s341_s28 = int_to_ptr.vmem [resolvable:$true] %s340_s28  ;;  %s339_s1 = int_to_ptr.hbm [resolvable:$true] %s338_s1 }
  0x50   : > { %s1590_s6 = sshra.s32 %s339_s1, 4  ;;  %s1597_s4 = scalar_lea.hbm %s2039_s2, 16  ;;  %s1591_s6 = int_to_ptr.hbm [resolvable:$true] %s1590_s6 }
  0x51   : > { %s1592_s19 = scalar_lea.hbm %s1591_s6, 8  ;;  %p1598_p10 = scmp.lt.s32.totalorder %s1591_s6, %s2039_s2 }
  0x52   : > { %p1593_p2 = scmp.ne.s32.totalorder %s1591_s6, %s1592_s19  ;;  %p1599_p6 = scmp.lt.s32.totalorder %s1597_s4, %s1592_s19 }
  0x54   : > { %p1595_p1 = pnand %p1593_p2, %p1474_p9  ;;  %p1600_p11 = por %p1599_p6, %p1598_p10 }
  0x56   : > { %p1596_p8 = pneg %p1595_p1 }
  0x58   : > { %p1601_p13 = pnand %p1600_p11, %p1596_p8 }
  0x5a   : > { %1604 = shalt.err (!%p1601_p13)
}
  0x5b   : > { %1341 = dma.hbm_to_vmem [thread:$0]  (!%p1840_p7), %s339_s1, 128, %s341_s28, %s1850_s30  }
  0x5c   : > { %349 = sbr.rel (%p1775_p3) target bundleno = 2320 (0x910), region = 48  ;;  %s1920_s12 = sand.u32 (!%p1775_p3), 1, %s1690_s25  }
  0x5d   : > { %s1923_s13 = sshll.u32 (!%p1775_p3), %s1920_s12, 3  ;;  %s352_s18 = scalar_lea.sflag (!%p1775_p3), [#allocation3], %s1920_s12 }
  0x5e   : > { %s355_s23 = scalar_lea.vmem (!%p1775_p3), [#allocation2], %s1923_s13 }
  0x61   : > { %1665 = dma.done.wait (%p1818_p12), %s352_s18, 128  }
  0x62   : > { %1667 = vsyncadd (%p1818_p12), %s352_s18, 4294967168  ;;  %s361_s9 = sand.u32 1, %s1770_s8   ;;  %s365_s14 = scalar_lea.vmem [#allocation5], %s1923_s13 }
  0x63   : > { %s362_s30 = scalar_lea.sflag [#allocation6], %s361_s9 }
  0x64   : > { %1669 = dma.done.wait (%p1818_p12), %s362_s30, 256  }
  0x65   : > { %1671 = vsyncadd (%p1818_p12), %s362_s30, 4294967040  ;;  %s375_s21 = scalar_lea.vmem [#allocation7], %s1923_s13  ;;  %p2074_p3 = scmp.eq.s32.totalorder %s1770_s8, 0 }
  0x67   : > { %1673 = dma.done.wait (%p2074_p3), [#allocation9], 2048   ;;  %p2075_p7 = pmov %p2074_p3 }
  0x68   : > { %p2076_p9 = pmov %p2074_p3 }
  0x69   : > { %1675 = vsyncadd (%p2075_p7), [#allocation9], 4294965248 }
  0x6a   : > { %1677 = dma.done.wait (%p2076_p9), [#allocation12], 2048   ;;  %p2077_p0 = pmov %p2074_p3 }
  0x6b   : > { %v443_v0 = vld [vmem:[#allocation10 + $0x8] sm:$0xff]  ;;  %v442_v2 = vld [vmem:[#allocation10] sm:$0xff]  ;;  %vm448_vm0 = vcmask 130048   ;;  %v1948_v5 = vld [vmem:[%s355_s23] sm:$0xff]  ;;  %vm545_vm1 = vcmask 64512   ;;  %s1292_s29 = sshll.u32 %s1770_s8, 3 }
  0x6c   : > { %1679 = vsyncadd (%p2077_p0), [#allocation12], 4294965248  ;;  %v441_v1 = vld [vmem:[#allocation8 + $0x8] sm:$0xff]  ;;  %490 = vmatpush.msra.mxu1 %v443_v0  ;;  %v440_v3 = vld [vmem:[#allocation8] sm:$0xff]  ;;  %s1085_s5 = scalar_lea.hbm %s2044_s7, %s1292_s29  ;;  %s436_s28 = scalar_lea.vmem [#allocation14], %s1923_s13 }
  0x6d   : > { %466 = vmatpush.msra.mxu0 %v441_v1  ;;  %v1946_v4 = vld [vmem:[%s365_s14] sm:$0xff]  ;;  %v1959_v13 = vld [vmem:[%s375_s21] sm:$0xff]  ;;  %s1087_s1 = sshll.u32 %s436_s28, 4  ;;  %s1089_s6 = sshll.u32 %s1085_s5, 4  ;;  %s1088_s1 = int_to_ptr.vmem [resolvable:$true] %s1087_s1  ;;  %s1090_s6 = int_to_ptr.hbm [resolvable:$true] %s1089_s6 }
  0x6e   : > { %491 = vmatpush.msra.mxu1 %v442_v2  ;;  %v445_v9 = vld [vmem:[#allocation11 + $0x8] sm:$0xff]  ;;  %v444_v12 = vld [vmem:[#allocation11] sm:$0xff]  ;;  %v585_v14 = vld [vmem:[#allocation10 + $0x18] sm:$0xff]  ;;  %s1075_s19 = scalar_lea.sflag [#allocation4], %s1920_s12  ;;  %s1634_s15 = sshra.s32 %s1090_s6, 4  ;;  %s1635_s15 = int_to_ptr.hbm [resolvable:$true] %s1634_s15 }
  0x6f   : > { %467 = vmatpush.msra.mxu0 %v440_v3  ;;  %1264 = vmatmul.msk.f32.vlgmr.msra.gmra.mxu1 %vm448_vm0, %v1946_v4  ;;  %v584_v15 = vld [vmem:[#allocation10 + $0x10] sm:$0xff]  ;;  %v582_v16 = vld [vmem:[#allocation8 + $0x18] sm:$0xff]  ;;  %v447_v27 = vld [vmem:[#allocation13 + $0x8] sm:$0xff]  ;;  %s1636_s22 = scalar_lea.hbm %s1635_s15, 8  ;;  %s1640_s20 = scalar_lea.hbm %s2044_s7, 16 }
  0x70   : > { %1263 = vmatmul.msk.f32.vlgmr.msra.gmra.mxu0 %vm448_vm0, %v1948_v5  ;;  %513 = vmatpush.msra.mxu2 %v445_v9  ;;  %v581_v17 = vld [vmem:[#allocation8 + $0x10] sm:$0xff]  ;;  %v588_v25 = vld [vmem:[#allocation11 + $0x18] sm:$0xff]  ;;  %v446_v33 = vld [vmem:[#allocation13] sm:$0xff]  ;;  %p1637_p12 = scmp.ne.s32.totalorder %s1635_s15, %s1636_s22  ;;  %p1641_p8 = scmp.lt.s32.totalorder %s1635_s15, %s2044_s7 }
  0x71   : > { %606 = vmatpush.msrb.mxu1 %v582_v16  ;;  %v587_v26 = vld [vmem:[#allocation11 + $0x10] sm:$0xff]  ;;  %v764_v43 = vld [vmem:[#allocation10 + $0x28] sm:$0xff]  ;;  %v763_v45 = vld [vmem:[#allocation10 + $0x20] sm:$0xff]  ;;  %p1642_p10 = scmp.lt.s32.totalorder %s1640_s20, %s1636_s22 }
  0x72   : > { %514 = vmatpush.msra.mxu2 %v444_v12  ;;  %v761_v44 = vld [vmem:[#allocation8 + $0x28] sm:$0xff]  ;;  %v760_v46 = vld [vmem:[#allocation8 + $0x20] sm:$0xff]  ;;  %v591_v47 = vld [vmem:[#allocation13 + $0x18] sm:$0xff]  ;;  %p1638_p2 = pnand %p1637_p12, %p1825_p4 }
  0x73   : > { %1265 = vmatmul.msk.f32.vlgmr.msra.gmra.mxu2 %vm448_vm0, %v1959_v13  ;;  %607 = vmatpush.msrb.mxu1 %v581_v17  ;;  %v590_v51 = vld [vmem:[#allocation13 + $0x10] sm:$0xff]  ;;  %v767_v56 = vld [vmem:[#allocation11 + $0x28] sm:$0xff]  ;;  %v766_v60 = vld [vmem:[#allocation11 + $0x20] sm:$0xff]  ;;  %p1643_p6 = por %p1642_p10, %p1641_p8 }
  0x74   : > { %627 = vmatpush.msrb.mxu2 %v585_v14  ;;  %v921_v3 = vld [vmem:[#allocation10 + $0x38] sm:$0xff]  ;;  %v917_v9 = vld [vmem:[#allocation8 + $0x30] sm:$0xff]  ;;  %p1639_p1 = pneg %p1638_p2 }
  0x76   : > { %628 = vmatpush.msrb.mxu2 %v584_v15  ;;  %v769_v15 = vld [vmem:[#allocation13 + $0x20] sm:$0xff]  ;;  %p1644_p11 = pnand %p1643_p6, %p1639_p1 }
  0x77   : > { %1269 = vmatmul.msk.f32.vlgmr.msrb.gmra.mxu1 %vm448_vm0, %v1948_v5 }
  0x78   : > { %730 = vmatpush.msra.mxu2 %v591_v47 }
  0x7a   : > { %731 = vmatpush.msra.mxu2 %v590_v51 }
  0x7b   : > { %1270 = vmatmul.msk.f32.vlgmr.msrb.gmra.mxu2 %vm448_vm0, %v1946_v4 }
  0x7c   : > { %826 = vmatpush.msrb.mxu2 %v767_v56 }
  0x7e   : > { %827 = vmatpush.msrb.mxu2 %v766_v60 }
  0xec   : > { %v493_v6 = vpop.f32.mrf.mxu1 }
  0xed   : > { %v469_v7 = vpop.f32.mrf.mxu0  ;;  %1266 = vmatpush.xpose.msk.msra.mxu3 %vm448_vm0, %v493_v6  ;;  %v918_v6 = vld [vmem:[#allocation8 + $0x38] sm:$0xff] }
  0xee   : > { %v472_v8 = vmul.f32 0.25, %v469_v7  ;;  %v920_v7 = vld [vmem:[#allocation10 + $0x30] sm:$0xff] }
  0xf0   : > { %1267 = vmatmul.msk.f32.vlgmr.msra.gmra.mxu3 %vm448_vm0, %v472_v8 }
  0xf1   : > { %647 = vmatpush.msrb.mxu3 %v588_v25 }
  0xf3   : > { %648 = vmatpush.msrb.mxu3 %v587_v26 }
  0xf4   : > { %v609_v31 = vpop.f32.mrf.mxu1 }
  0xf5   : > { %753 = vmatpush.msra.mxu3 %v447_v27  ;;  %v612_v32 = vmul.f32 0.25, %v609_v31  ;;  %v927_v31 = vld [vmem:[#allocation13 + $0x38] sm:$0xff] }
  0xf6   : > { %v516_v23 = vpop.f32.mrf.mxu2 }
  0xf7   : > { %575 = vmatpush.msrb.mxu0 %v516_v23  ;;  %754 = vmatpush.msra.mxu3 %v446_v33  ;;  %v924_v23 = vld [vmem:[#allocation11 + $0x38] sm:$0xff] }
  0xf8   : > { %1271 = vmatmul.msk.f32.vlgmr.msrb.gmra.mxu3 %vm448_vm0, %v1959_v13 }
  0xfe   : > { %v630_v24 = vpop.f32.mrf.mxu2 }
  0xff   : > { %1272 = vmatpush.xpose.msk.msra.mxu0 %vm448_vm0, %v630_v24  ;;  %v923_v24 = vld [vmem:[#allocation11 + $0x30] sm:$0xff] }
 0x173   : > { %v542_v10 = vpop.f32.mrf.mxu3 }
 0x174   : > { %v546_v11 = vsel %vm545_vm1, %v542_v10, -inf }
 0x175   : > { %547 = vmax.xlane.f32.xlu0 %v546_v11 }
 0x17b   : > { %v650_v34 = vpop.f32.mrf.mxu3 }
 0x17c   : > { %708 = vmatpush.msra.mxu1 %v650_v34 }
 0x17e   : > { %806 = vmatpush.msrb.mxu1 %v764_v43 }
 0x180   : > { %807 = vmatpush.msrb.mxu1 %v763_v45 }
 0x1e8   : > { %v548_v18 = vpop.xlane.xlu0 %547 }
 0x1e9   : > { %v549_v19 = vsub.f32 %v542_v10, %v548_v18  ;;  %v770_v10 = vld [vmem:[#allocation13 + $0x28] sm:$0xff] }
 0x1eb   : > { %v550_v20 = vmul.f32 1.442695, %v549_v19 }
 0x1ed   : > { %1394 = vpow2.f32 %v550_v20 }
 0x1f3   : > { %v1395_v21 = vpop.eup %1394 }
 0x1f4   : > { %v552_v22 = vsel %vm545_vm1, %v1395_v21, 0.0 }
 0x1f5   : > { %553 = vadd.xlane.f32.xlu0 %v552_v22 }
 0x268   : > { %v554_v28 = vpop.xlane.xlu0 %553 }
 0x269   : > { %1396 = vrcp.f32 %v554_v28 }
 0x26f   : > { %v1397_v29 = vpop.eup %1396 }
 0x270   : > { %v556_v30 = vmul.f32 %v1397_v29, %v1395_v21 }
 0x272   : > { %1268 = vmatmul.msk.f32.vlgmr.msrb.gmra.mxu0 %vm545_vm1, %v556_v30 }
 0x273   : > { %785 = vmatpush.msrb.mxu0 %v761_v44 }
 0x275   : > { %786 = vmatpush.msrb.mxu0 %v760_v46 }
 0x27a   : > { %1273 = vmatmul.msk.f32.vlgmr.msra.gmra.mxu0 %vm448_vm0, %v612_v32 }
 0x282   : > { %1277 = vmatmul.msk.f32.vlgmr.msrb.gmra.mxu0 %vm448_vm0, %v1948_v5 }
 0x2ef   : > { %v577_v35 = vpop.f32.mrf.mxu0 }
 0x2f0   : > { %1276 = vmatmul.msk.f32.vlgmr.msra.gmra.mxu3 %vm448_vm0, %v577_v35 }
 0x2f7   : > { %v676_v36 = vpop.f32.mrf.mxu0 }
 0x2f8   : > { %v679_v37 = vsel %vm545_vm1, %v676_v36, -inf }
 0x2f9   : > { %680 = vmax.xlane.f32.xlu1 %v679_v37 }
 0x2ff   : > { %v788_v53 = vpop.f32.mrf.mxu0 }
 0x300   : > { %v791_v55 = vmul.f32 0.25, %v788_v53 }
 0x36c   : > { %v681_v38 = vpop.xlane.xlu1 %680 }
 0x36d   : > { %v682_v39 = vsub.f32 %v676_v36, %v681_v38 }
 0x36f   : > { %v683_v40 = vmul.f32 1.442695, %v682_v39 }
 0x371   : > { %1398 = vpow2.f32 %v683_v40 }
 0x373   : > { %v756_v57 = vpop.f32.mrf.mxu3 }
 0x377   : > { %v1399_v41 = vpop.eup %1398 }
 0x378   : > { %v685_v42 = vsel %vm545_vm1, %v1399_v41, 0.0 }
 0x379   : > { %686 = vadd.xlane.f32.xlu1 %v685_v42 }
 0x3ec   : > { %v687_v48 = vpop.xlane.xlu1 %686 }
 0x3ed   : > { %1400 = vrcp.f32 %v687_v48 }
 0x3f3   : > { %v1401_v49 = vpop.eup %1400 }
 0x3f4   : > { %v689_v50 = vmul.f32 %v1401_v49, %v1399_v41 }
 0x3f6   : > { %1274 = vmatmul.msk.f32.vlgmr.msra.gmra.mxu1 %vm545_vm1, %v689_v50 }
 0x3f7   : > { %909 = vmatpush.msra.mxu1 %v770_v10 }
 0x3f9   : > { %910 = vmatpush.msra.mxu1 %v769_v15 }
 0x3fe   : > { %1278 = vmatmul.msk.f32.vlgmr.msrb.gmra.mxu1 %vm448_vm0, %v1946_v4 }
 0x473   : > { %v710_v52 = vpop.f32.mrf.mxu1 }
 0x474   : > { %1275 = vmatmul.msk.f32.vlgmr.msra.gmra.mxu2 %vm448_vm0, %v710_v52 }
 0x475   : > { %942 = vmatpush.msra.mxu2 %v918_v6 }
 0x477   : > { %943 = vmatpush.msra.mxu2 %v917_v9 }
 0x47b   : > { %v809_v54 = vpop.f32.mrf.mxu1 }
 0x47c   : > { %1280 = vmatpush.xpose.msk.msrb.mxu3 %vm448_vm0, %v809_v54  ;;  %1279 = vmatmul.msk.f32.vlgmr.msrb.gmra.mxu2 %vm448_vm0, %v1959_v13 }
 0x47f   : > { %1281 = vmatmul.msk.f32.vlgmr.msrb.gmra.mxu3 %vm448_vm0, %v791_v55 }
 0x480   : > { %963 = vmatpush.msra.mxu3 %v921_v3 }
 0x482   : > { %964 = vmatpush.msra.mxu3 %v920_v7 }
 0x484   : > { %1284 = vmatmul.msk.f32.vlgmr.msra.gmra.mxu2 %vm448_vm0, %v1948_v5  ;;  %1066 = vmatpush.msrb.mxu3 %v927_v31 }
 0x487   : > { %1285 = vmatmul.msk.f32.vlgmr.msra.gmra.mxu3 %vm448_vm0, %v1946_v4 }
 0x4f7   : > { %v733_v2 = vpop.f32.mrf.mxu2 }
 0x4f8   : > { %v757_v5 = vadd.f32 %v756_v57, %v733_v2 }
 0x4ff   : > { %v829_v8 = vpop.f32.mrf.mxu2 }
 0x500   : > { %887 = vmatpush.msra.mxu0 %v829_v8 }
 0x502   : > { %v855_v58 = vpop.f32.mrf.mxu3  ;;  %983 = vmatpush.msrb.mxu0 %v924_v23 }
 0x503   : > { %v858_v59 = vsel %vm545_vm1, %v855_v58, -inf }
 0x504   : > { %859 = vmax.xlane.f32.xlu2 %v858_v59  ;;  %984 = vmatpush.msrb.mxu0 %v923_v24 }
 0x507   : > { %v945_v4 = vpop.f32.mrf.mxu2 }
 0x508   : > { %v948_v18 = vmul.f32 0.25, %v945_v4 }
 0x50a   : > { %v966_v16 = vpop.f32.mrf.mxu3 }
 0x50b   : > { %1287 = vmatpush.xpose.msk.msrb.mxu1 %vm448_vm0, %v966_v16 }
 0x577   : > { %v860_v61 = vpop.xlane.xlu2 %859 }
 0x578   : > { %v861_v62 = vsub.f32 %v855_v58, %v860_v61 }
 0x57a   : > { %v862_v63 = vmul.f32 1.442695, %v861_v62 }
 0x57c   : > { %1402 = vpow2.f32 %v862_v63 }
 0x582   : > { %v1403_v0 = vpop.eup %1402 }
 0x583   : > { %v864_v1 = vsel %vm545_vm1, %v1403_v0, 0.0 }
 0x584   : > { %865 = vadd.xlane.f32.xlu2 %v864_v1 }
 0x5f7   : > { %v866_v11 = vpop.xlane.xlu2 %865 }
 0x5f8   : > { %1404 = vrcp.f32 %v866_v11 }
 0x5fe   : > { %v1405_v12 = vpop.eup %1404 }
 0x5ff   : > { %v868_v14 = vmul.f32 %v1405_v12, %v1403_v0 }
 0x601   : > { %1282 = vmatmul.msk.f32.vlgmr.msra.gmra.mxu0 %vm545_vm1, %v868_v14 }
 0x609   : > { %1286 = vmatmul.msk.f32.vlgmr.msrb.gmra.mxu0 %vm448_vm0, %v1959_v13  ;;  %v926_v13 = vld [vmem:[#allocation13 + $0x30] sm:$0xff] }
 0x60a   : > { %1067 = vmatpush.msrb.mxu3 %v926_v13 }
 0x67e   : > { %v889_v17 = vpop.f32.mrf.mxu0 }
 0x67f   : > { %1283 = vmatmul.msk.f32.vlgmr.msra.gmra.mxu1 %vm448_vm0, %v889_v17 }
 0x686   : > { %v986_v30 = vpop.f32.mrf.mxu0 }
 0x687   : > { %1288 = vmatmul.msk.f32.vlgmr.msrb.gmra.mxu1 %vm448_vm0, %v948_v18  ;;  %1044 = vmatpush.msrb.mxu2 %v986_v30 }
 0x6fc   : > { %v912_v19 = vpop.f32.mrf.mxu1 }
 0x6fd   : > { %v915_v20 = vadd.f32 %v912_v19, %v757_v5 }
 0x704   : > { %v1012_v21 = vpop.f32.mrf.mxu1 }
 0x705   : > { %v1015_v22 = vsel %vm545_vm1, %v1012_v21, -inf }
 0x706   : > { %1016 = vmax.xlane.f32.xlu0 %v1015_v22 }
 0x779   : > { %v1017_v25 = vpop.xlane.xlu0 %1016 }
 0x77a   : > { %v1018_v26 = vsub.f32 %v1012_v21, %v1017_v25 }
 0x77c   : > { %v1019_v27 = vmul.f32 1.442695, %v1018_v26 }
 0x77e   : > { %1406 = vpow2.f32 %v1019_v27 }
 0x784   : > { %v1407_v28 = vpop.eup %1406 }
 0x785   : > { %v1021_v29 = vsel %vm545_vm1, %v1407_v28, 0.0 }
 0x786   : > { %1022 = vadd.xlane.f32.xlu1 %v1021_v29 }
 0x7f9   : > { %v1023_v32 = vpop.xlane.xlu1 %1022 }
 0x7fa   : > { %1408 = vrcp.f32 %v1023_v32 }
 0x800   : > { %v1409_v33 = vpop.eup %1408 }
 0x801   : > { %v1025_v34 = vmul.f32 %v1409_v33, %v1407_v28 }
 0x803   : > { %1289 = vmatmul.msk.f32.vlgmr.msrb.gmra.mxu2 %vm545_vm1, %v1025_v34 }
 0x886   : > { %v1046_v35 = vpop.f32.mrf.mxu2 }
 0x887   : > { %1290 = vmatmul.msk.f32.vlgmr.msrb.gmra.mxu3 %vm448_vm0, %v1046_v35 }
 0x90a   : > { %v1069_v36 = vpop.f32.mrf.mxu3 }
 0x90b   : > { %v1072_v37 = vadd.f32 %v1069_v36, %v915_v20 }
 0x90d   : > { %1073 = vst.msk [vmem:[%s436_s28] sm:$0xff] %vm448_vm0, %v1072_v37 }
 0x90e   : > { %1647 = shalt.err (!%p1644_p11)
}
 0x90f   : > { %1317 = dma.vmem_to_hbm [thread:$0]  (%p1825_p4), %s1088_s1, 128, %s1090_s6, %s1075_s19  }
 0x910 PF: > { %s1101_s12 = sand.u32 1, %s1686_s24   ;;  %p2078_p13 = scmp.ge.s32.totalorder %s1698_s27, 2 }
 0x911   : > { %s1102_s18 = scalar_lea.sflag [#allocation4], %s1101_s12 }
 0x912   : > { %p1343_p3 = pnand %p2078_p13, %p1829_p5 }
 0x914   : > { %p1344_p7 = pneg %p1343_p3 }
 0x916   : > { %1681 = dma.done.wait (%p1344_p7), %s1102_s18, 128  }
 0x917   : > { %1683 = vsyncadd (%p1344_p7), %s1102_s18, 4294967168  ;;  %s2079_s27 = sld [smem:[#allocation20_spill]]  ;;  %s2081_s24 = smov %s1690_s25 }
 0x918   : > { %s2080_s23 = sld [smem:[#allocation21_spill]]  ;;  %s2082_s25 = smov %s1694_s26 }
 0x91d   : > { %p25_p9 = scmp.ge.s32.totalorder %s2079_s27, 4  }
 0x91e   : > { %s2083_s26 = smov %s2080_s23 }
 0x91f   :  { %27 = sbr.rel (!%p25_p9) target bundleno = 15 (0xf), region = 145 }
 0x924   :  { %1108 = vsyncpa [#allocation3], 1 }
 0x925   :  { %1110 = vsyncpa [#allocation3 + $0x1], 1 }
 0x926   :  { %1111 = vsyncpa [#allocation6], 1 }
 0x927   :  { %1113 = vsyncpa [#allocation6 + $0x1], 1 }
 0x928   :  { %1114 = vsyncpa [#allocation9], 1 }
 0x929   :  { %1115 = vsyncpa [#allocation12], 1 }
 0x92a   :  { %1116 = vsyncpa [#allocation4], 1 }
 0x92b   :  { %1118 = vsyncpa [#allocation4 + $0x1], 1 }

</bundles_post_ra>
